<compile_context>
chip_gen: v7x
topology: tpu7x:2x2x1
jax: 0.10.0
libtpu: 0.0.40
codegen_flags: <defaults>
</compile_context>

<pallas_src>
import jax
import jax.numpy as jnp
from jax.experimental import pallas as pl
from jax.experimental.pallas import tpu as pltpu


def _model_kernel(p_ref, a_ref, b_ref, c_ref, o_ref):
    # p_ref is SMEM f32[8]: [w1, b1, w2, b2, w3, b3, w4, b4].
    # Slots 2-3 (w2, b2) belong to the dead linear2 branch and are never read.
    w1 = p_ref[0]
    b1 = p_ref[1]
    w3 = p_ref[4]
    b3 = p_ref[5]
    w4 = p_ref[6]
    b4 = p_ref[7]

    # Scalar-unit folding of the affine chain + epilogue:
    #   x3  = lin3(lin3(y))           = (w3*w3)   * y  + (w3*b3 + b3)
    #   out = 3*lin4(lin3(x3)) + 2*x4 = (3*w4*w3) * x3 + 3*(w4*b3 + b4) + 2*x4
    c_x3 = w3 * w3
    d_x3 = w3 * b3 + b3
    c_o = 3.0 * (w4 * w3)
    d_o = 3.0 * (w4 * b3 + b4)

    a = a_ref[...]   # (tm, K)  row-tile of input1
    b = b_ref[...]   # (K,  N)  input2, fully resident
    c = c_ref[...]   # (N,  P)  input3, fully resident

    # lin1 folded into the first matmul's epilogue (no materialized `m`):
    #   (w1*a + b1) @ b = w1*(a @ b) + b1*colsum(b)
    colsum_b = jnp.sum(b, axis=0, keepdims=True)               # XLU reduce, (1, N)
    ab = jnp.dot(a, b, preferred_element_type=jnp.float32)     # MXU pass 1
    y = w1 * ab + b1 * colsum_b                                # x1 = lin1(input1) @ input2
    x3 = c_x3 * y + d_x3                                       # lin3(lin3(x1))
    x4 = jnp.dot(x3, c, preferred_element_type=jnp.float32)    # MXU pass 2: x3 @ input3
    o_ref[...] = c_o * x3 + (2.0 * x4 + d_o)                   # 3*x2 + 2*x4


def _pick_row_tile(m, max_tm=512):
    """Largest row-tile <= max_tm that divides m and respects the (8,128) rule."""
    if m % 8 != 0 or m <= max_tm:
        return m                       # single block == full array dims (always legal)
    tm = max_tm - (max_tm % 8)
    while m % tm != 0:
        tm -= 8
    return tm


def model_forward(input1, input2, input3, params, *, tm=None):
    m, k = input1.shape
    k2, n = input2.shape
    n2, n_out = input3.shape
    assert k2 == k and n2 == n, "shape mismatch in matmul chain"

    if tm is None:
        tm = _pick_row_tile(m)
    assert m % tm == 0, "row tile must divide M"
    grid = (m // tm,)

    smem = pl.BlockSpec(memory_space=pltpu.MemorySpace.SMEM)   # scalar params

    return pl.pallas_call(
        _model_kernel,
        out_shape=jax.ShapeDtypeStruct((m, n_out), jnp.float32),
        grid=grid,
        in_specs=[
            smem,                                              # params -> SMEM
            pl.BlockSpec((tm, k), lambda i: (i, 0)),           # input1 row-tile
            pl.BlockSpec((k, n), lambda i: (0, 0)),            # input2 resident
            pl.BlockSpec((n, n_out), lambda i: (0, 0)),        # input3 resident
        ],
        out_specs=pl.BlockSpec((tm, n_out), lambda i: (i, 0)),
        compiler_params=pltpu.CompilerParams(
            dimension_semantics=("parallel",),                 # shards across v7x TCs
            vmem_limit_bytes=48 * 1024 * 1024,                 # v7x-safe budget
        ),
    )(params, input1, input2, input3)


def _reference(input1, input2, input3, params):
    """Pure-JAX reference: faithful, unfolded translation of Model.forward."""
    w1, b1, w2, b2, w3, b3, w4, b4 = [params[i] for i in range(8)]
    lin = lambda x, w, bias: x * w + bias
    x1 = input1 @ input1
    x2 = lin(input1, w1, b1)
    x3 = x2 @ x1
    x4 = lin(x3, w2, b2)          # dead value, kept for fidelity
    x1 = x2 @ input2
    x2 = lin(x1, w3, b3)
    x3 = lin(x2, w3, b3)
    x4 = x3 @ input3
    x1 = lin(x3, w3, b3)
    x2 = lin(x1, w4, b4)
    x3 = x4 + x2
    return x2 + x3 + x3


if __name__ == "__main__":
    key = jax.random.PRNGKey(0)
    k1, k2, k3, kp, kl = jax.random.split(key, 5)

    # --- spec-sized problem: torch.randn(4, 4) inputs ---
    N = 4
    input1 = jax.random.normal(k1, (N, N), dtype=jnp.float32)
    input2 = jax.random.normal(k2, (N, N), dtype=jnp.float32)
    input3 = jax.random.normal(k3, (N, N), dtype=jnp.float32)

    # Linear(1,1) params: PyTorch init is U(-1, 1) for weight and bias
    # (bound = 1/sqrt(in_features) = 1).  Deterministic via PRNGKey(0).
    params = jax.random.uniform(kp, (8,), dtype=jnp.float32,
                                minval=-1.0, maxval=1.0)

    out = jax.block_until_ready(model_forward(input1, input2, input3, params))
    ref = _reference(input1, input2, input3, params)
    assert out.shape == (N, N)
    assert jnp.allclose(out, ref, atol=1e-4, rtol=1e-4), "4x4 mismatch vs reference"

    # --- larger problem to exercise the tiled, multi-step 'parallel' grid path ---
    M = 256
    big = jax.random.normal(kl, (3, M, M), dtype=jnp.float32)
    out_big = jax.block_until_ready(
        model_forward(big[0], big[1], big[2], params, tm=128))
    ref_big = _reference(big[0], big[1], big[2], params)
    assert out_big.shape == (M, M)
    assert jnp.allclose(out_big, ref_big, atol=1e-2, rtol=1e-3), \
        "256x256 mismatch vs reference"

    print("KERNEL_OK")
</pallas_src>

<mosaic_0001>
module attributes {stable_mosaic.version = 11 : i64} {
  func.func @_model_kernel(%arg0: i32, %arg1: memref<8xf32, #tpu.memory_space<smem>>, %arg2: memref<4x4xf32, #tpu.memory_space<vmem>>, %arg3: memref<4x4xf32, #tpu.memory_space<vmem>>, %arg4: memref<4x4xf32, #tpu.memory_space<vmem>>, %arg5: memref<4x4xf32, #tpu.memory_space<vmem>>) attributes {dimension_semantics = [#tpu.dimension_semantics<parallel>], iteration_bounds = array<i64: 1>, scalar_prefetch = 0 : i64, scratch_operands = 0 : i64, tpu.core_type = #tpu.core_type<tc>, window_params = [{transform_indices = @transform_0, window_bounds = array<i64: 8>}, {transform_indices = @transform_1, window_bounds = array<i64: 4, 4>}, {pipeline_mode = #tpu.pipeline_mode<synchronous>, transform_indices = @transform_2, window_bounds = array<i64: 4, 4>}, {pipeline_mode = #tpu.pipeline_mode<synchronous>, transform_indices = @transform_3, window_bounds = array<i64: 4, 4>}, {transform_indices = @transform_4, window_bounds = array<i64: 4, 4>}]} {
    %c0 = arith.constant 0 : index
    %0 = memref.load %arg1[%c0] : memref<8xf32, #tpu.memory_space<smem>>
    %c1 = arith.constant 1 : index
    %1 = memref.load %arg1[%c1] : memref<8xf32, #tpu.memory_space<smem>>
    %c4 = arith.constant 4 : index
    %2 = memref.load %arg1[%c4] : memref<8xf32, #tpu.memory_space<smem>>
    %c5 = arith.constant 5 : index
    %3 = memref.load %arg1[%c5] : memref<8xf32, #tpu.memory_space<smem>>
    %c6 = arith.constant 6 : index
    %4 = memref.load %arg1[%c6] : memref<8xf32, #tpu.memory_space<smem>>
    %c7 = arith.constant 7 : index
    %5 = memref.load %arg1[%c7] : memref<8xf32, #tpu.memory_space<smem>>
    %6 = arith.mulf %2, %2 : f32
    %7 = arith.mulf %2, %3 : f32
    %8 = arith.addf %7, %3 : f32
    %9 = arith.mulf %4, %2 : f32
    %cst = arith.constant 3.000000e+00 : f32
    %10 = arith.mulf %cst, %9 : f32
    %11 = arith.mulf %4, %3 : f32
    %12 = arith.addf %11, %5 : f32
    %cst_0 = arith.constant 3.000000e+00 : f32
    %13 = arith.mulf %cst_0, %12 : f32
    %c0_1 = arith.constant 0 : index
    %c0_2 = arith.constant 0 : index
    %14 = vector.load %arg2[%c0_1, %c0_2] : memref<4x4xf32, #tpu.memory_space<vmem>>, vector<4x4xf32>
    %c0_3 = arith.constant 0 : index
    %c0_4 = arith.constant 0 : index
    %15 = vector.load %arg3[%c0_3, %c0_4] : memref<4x4xf32, #tpu.memory_space<vmem>>, vector<4x4xf32>
    %c0_5 = arith.constant 0 : index
    %c0_6 = arith.constant 0 : index
    %16 = vector.load %arg4[%c0_5, %c0_6] : memref<4x4xf32, #tpu.memory_space<vmem>>, vector<4x4xf32>
    %cst_7 = arith.constant dense<0.000000e+00> : vector<4xf32>
    %17 = vector.multi_reduction <add>, %15, %cst_7 [0] : vector<4x4xf32> to vector<4xf32>
    %18 = vector.shape_cast %17 : vector<4xf32> to vector<1x4xf32>
    %cst_8 = arith.constant dense<0.000000e+00> : vector<4x4xf32>
    %19 = tpu.matmul %14, %15, %cst_8 {dimension_numbers = #tpu.dot_dimension_numbers<[1], [0], [0], [1], [0, 0, 1, 1], [], []>} : vector<4x4xf32>, vector<4x4xf32>, vector<4x4xf32> -> vector<4x4xf32>
    %20 = vector.broadcast %0 : f32 to vector<4x4xf32>
    %21 = arith.mulf %20, %19 : vector<4x4xf32>
    %22 = vector.broadcast %1 : f32 to vector<1x4xf32>
    %23 = arith.mulf %22, %18 : vector<1x4xf32>
    %24 = vector.broadcast %23 : vector<1x4xf32> to vector<4x4xf32>
    %25 = arith.addf %21, %24 : vector<4x4xf32>
    %26 = vector.broadcast %6 : f32 to vector<4x4xf32>
    %27 = arith.mulf %26, %25 : vector<4x4xf32>
    %28 = vector.broadcast %8 : f32 to vector<4x4xf32>
    %29 = arith.addf %27, %28 : vector<4x4xf32>
    %cst_9 = arith.constant dense<0.000000e+00> : vector<4x4xf32>
    %30 = tpu.matmul %29, %16, %cst_9 {dimension_numbers = #tpu.dot_dimension_numbers<[1], [0], [0], [1], [0, 0, 1, 1], [], []>} : vector<4x4xf32>, vector<4x4xf32>, vector<4x4xf32> -> vector<4x4xf32>
    %31 = vector.broadcast %10 : f32 to vector<4x4xf32>
    %32 = arith.mulf %31, %29 : vector<4x4xf32>
    %cst_10 = arith.constant 2.000000e+00 : f32
    %33 = vector.broadcast %cst_10 : f32 to vector<4x4xf32>
    %34 = arith.mulf %33, %30 : vector<4x4xf32>
    %35 = vector.broadcast %13 : f32 to vector<4x4xf32>
    %36 = arith.addf %34, %35 : vector<4x4xf32>
    %37 = arith.addf %32, %36 : vector<4x4xf32>
    %c0_11 = arith.constant 0 : index
    %c0_12 = arith.constant 0 : index
    %38 = vector.load %arg5[%c0_11, %c0_12] : memref<4x4xf32, #tpu.memory_space<vmem>>, vector<4x4xf32>
    tpu.vector_store %arg5[%c0_11, %c0_12], %37 {strides = array<i32>} : memref<4x4xf32, #tpu.memory_space<vmem>>, vector<4x4xf32>,
    return
  }
  func.func @transform_0(%arg0: i32) -> i32 {
    %c0_i32 = arith.constant 0 : i32
    %c0_i32_0 = arith.constant 0 : i32
    return %c0_i32 : i32
  }
  func.func @transform_1(%arg0: i32) -> (i32, i32) {
    %c0_i32 = arith.constant 0 : i32
    %c0_i32_0 = arith.constant 0 : i32
    return %arg0, %c0_i32 : i32, i32
  }
  func.func @transform_2(%arg0: i32) -> (i32, i32) {
    %c0_i32 = arith.constant 0 : i32
    %c0_i32_0 = arith.constant 0 : i32
    %c0_i32_1 = arith.constant 0 : i32
    return %c0_i32, %c0_i32_0 : i32, i32
  }
  func.func @transform_3(%arg0: i32) -> (i32, i32) {
    %c0_i32 = arith.constant 0 : i32
    %c0_i32_0 = arith.constant 0 : i32
    %c0_i32_1 = arith.constant 0 : i32
    return %c0_i32, %c0_i32_0 : i32, i32
  }
  func.func @transform_4(%arg0: i32) -> (i32, i32) {
    %c0_i32 = arith.constant 0 : i32
    %c0_i32_0 = arith.constant 0 : i32
    return %arg0, %c0_i32 : i32, i32
  }
}

</mosaic_0001>

<bundles_post_ra>
// kernel: tpu_custom_call.1
= control target key start
LH: loop header
LB: loop body
LE: loop exit
PB: predicated region body
PF: predicated region fallthrough
CT: control target
= control target key end

     0   :  { %9 = vsyncpa [#allocation5], 0  ;;  %s416_s0 = inlined_call_operand.hbm [shape: f32[8], index: 0, kind: input, shape index: {}]   ;;  %s417_s1 = inlined_call_operand.hbm [shape: f32[4,4], index: 1, kind: input, shape index: {}]   ;;  %s418_s2 = inlined_call_operand.vmem [shape: f32[4,4], index: 2, kind: input, shape index: {}]   ;;  %s419_s3 = inlined_call_operand.vmem [shape: f32[4,4], index: 3, kind: input, shape index: {}]   ;;  %s420_s4 = inlined_call_operand.hbm [shape: f32[4,4], index: 4, kind: output, shape index: {}]  }
   0x1   :  { %10 = vsyncpa [#allocation3], 0 }
   0x2   :  { %11 = vsyncpa [#allocation4], 0  ;;  %s280_s17 = scalar_lea.hbm %s416_s0, 16 }
   0x3   :  { %p281_p0 = scmp.ne.s32.totalorder %s416_s0, %s280_s17  ;;  %p284_p1 = scmp.lt.u32.totalorder %s280_s17, %s416_s0 }
   0x5   :  { %p286_p2 = pnand %p284_p1, %p281_p0 }
   0x7   :  { %289 = shalt.err (!%p286_p2)
}
   0x8   :  { %s340_s22 = smov [#allocation2]   ;;  %s341_s25 = smov [#allocation6]  }
   0x9   :  { %19 = dma.hbm_to_smem %s416_s0, 16, %s340_s22, [#allocation5]  }
   0xa   :  { %s26_s26 = sshll.u32 %s341_s25, 4  ;;  %s290_s29 = scalar_lea.hbm %s417_s1, 64  ;;  %s27_s26 = int_to_ptr.vmem [resolvable:$true] %s26_s26 }
   0xb   :  { %p291_p3 = scmp.ne.s32.totalorder %s417_s1, %s290_s29  ;;  %p294_p4 = scmp.lt.u32.totalorder %s290_s29, %s417_s1 }
   0xd   :  { %p296_p5 = pnand %p294_p4, %p291_p3 }
   0xf   :  { %299 = shalt.err (!%p296_p5)
}
  0x10   :  { %s300_s8 = scalar_lea.vmem %s27_s26, 64  ;;  %p305_p7 = scmp.lt.s32.totalorder %s27_s26, %s27_s26 }
  0x11   :  { %p301_p6 = scmp.ne.s32.totalorder %s27_s26, %s300_s8  ;;  %p306_p8 = scmp.lt.s32.totalorder %s300_s8, %s300_s8 }
  0x13   :  { %p307_p9 = por %p306_p8, %p305_p7 }
  0x15   :  { %p308_p10 = pnand %p307_p9, %p301_p6 }
  0x17   :  { %311 = shalt.err (!%p308_p10)
}
  0x18   :  { %29 = dma.hbm_to_vmem [thread:$0]  %s417_s1, 64, %s27_s26, [#allocation3]  }
  0x19   :  { %334 = dma.done.wait [#allocation5], 16  }
  0x1a   :  { %335 = vsyncadd [#allocation5], 4294967280 }
  0x1b   :  { %336 = dma.done.wait [#allocation3], 64  }
  0x1c   :  { %337 = vsyncadd [#allocation3], 4294967232 }
  0x1d   :  { %40 = sfence }
  0x1e   :  { %v56_v0 = vld [vmem:[%s418_s2] sm:$0xf]  ;;  %vm70_vm0 = vcmask 1043456   ;;  %v342_v1 = vmov 0.0   ;;  %vm343_vm1 = vmmov 0   ;;  %vm66_vm2 = vcmask 31744  }
  0x1f   :  { %265 = vmatprep.subr.mxu0 %v342_v1  ;;  %267 = vmatprep.mubr.msk.f32.mxu0 %vm343_vm1, %v342_v1  ;;  %v55_v2 = vld [vmem:[#allocation6] sm:$0xf]  ;;  %v57_v3 = vld [vmem:[%s419_s3] sm:$0xf]  ;;  %vm58_vm3 = vcmask 27648   ;;  %s252_s2 = sld [smem:[#allocation2 + $0x1]] }
  0x20   :  { %266 = vmatpush3.msk.msra.mxu0 %vm70_vm0, %v56_v0  ;;  %270 = vmatprep.subr.mxu1 %v342_v1  ;;  %v59_v4 = vsel %vm58_vm3, %v56_v0, 0.0  ;;  %s253_s13 = sld [smem:[#allocation2 + $0x4]]  ;;  %s254_s14 = sld [smem:[#allocation2 + $0x5]] }
  0x21   :  { %268 = vmatmul.mubr.msk.f32.vlgmr.msra.gmra.mrb[0].mxu0 %vm66_vm2, %v55_v2  ;;  %272 = vmatprep.mubr.msk.f32.mxu1 %vm343_vm1, %v342_v1  ;;  %v60_v5 = vrot.slane %v59_v4, 4  ;;  %s41_s15 = sld [smem:[#allocation2]]  ;;  %s255_s18 = sld [smem:[#allocation2 + $0x6]] }
  0x22   :  { %271 = vmatpush3.msk.msra.mxu1 %vm70_vm0, %v57_v3  ;;  %s256_s19 = sld [smem:[#allocation2 + $0x7]]  ;;  %s344_s25 = smov [#allocation7]  }
  0x23   :  { %v61_v6 = vadd.f32 %v60_v5, %v59_v4  ;;  %s242_s26 = sshll.u32 %s344_s25, 4  ;;  %s243_s26 = int_to_ptr.vmem [resolvable:$true] %s242_s26 }
  0x24   :  { %s312_s27 = scalar_lea.vmem %s243_s26, 64  ;;  %p317_p12 = scmp.lt.s32.totalorder %s243_s26, %s243_s26 }
  0x25   :  { %v62_v7 = vrot.slane %v61_v6, 2  ;;  %v146_v11 = vstv %s252_s2  ;;  %p313_p11 = scmp.ne.s32.totalorder %s243_s26, %s312_s27  ;;  %p318_p13 = scmp.lt.s32.totalorder %s312_s27, %s312_s27 }
  0x26   :  { %s48_s16 = smul.f32 %s254_s14, %s253_s13 }
  0x27   :  { %v63_v8 = vadd.f32 %v62_v7, %v61_v6  ;;  %s47_s17 = smul.f32 %s253_s13, %s253_s13  ;;  %v144_v12 = vstv %s41_s15  ;;  %p319_p0 = por %p318_p13, %p317_p12 }
  0x28   :  { %s49_s3 = sadd.f32 %s254_s14, %s48_s16  ;;  %s52_s20 = smul.f32 %s255_s18, %s254_s14 }
  0x29   :  { %v64_v9 = vrot.slane %v63_v8, 1  ;;  %v149_v17 = vstv %s47_s17  ;;  %s50_s21 = smul.f32 %s255_s18, %s253_s13  ;;  %p320_p1 = pnand %p319_p0, %p313_p11 }
  0x2a   :  { %v151_v19 = vstv %s49_s3  ;;  %s53_s22 = sadd.f32 %s256_s19, %s52_s20 }
  0x2b   :  { %v65_v10 = vadd.f32 %v64_v9, %v63_v8  ;;  %s51_s23 = smul.f32 3.0, %s50_s21 }
  0x2c   :  { %s54_s24 = smul.f32 3.0, %s53_s22 }
  0x2d   :  { %v147_v13 = vmul.f32 %v146_v11, %v65_v10  ;;  %v229_v24 = vstv %s51_s23 }
  0x2e   :  { %v232_v23 = vstv %s54_s24 }
  0xf4   :  { %v140_v14 = vpop.f32.mrb[0].mxu0 }
  0xf5   :  { %v145_v15 = vmul.f32 %v144_v12, %v140_v14  ;;  %v269_v16 = vpop.f32.mrb[1].mxu0 }
  0xf7   :  { %v148_v18 = vadd.f32 %v147_v13, %v145_v15 }
  0xf9   :  { %v150_v20 = vmul.f32 %v149_v17, %v148_v18 }
  0xfb   :  { %v152_v21 = vadd.f32 %v151_v19, %v150_v20 }
  0xfd   :  { %273 = vmatmul.mubr.msk.f32.vlgmr.msra.gmra.mrb[0].mxu1 %vm66_vm2, %v152_v21  ;;  %v230_v28 = vmul.f32 %v229_v24, %v152_v21 }
 0x1d0   :  { %v225_v22 = vpop.f32.mrb[0].mxu1 }
 0x1d1   :  { %v231_v25 = vmul.f32 2.0, %v225_v22  ;;  %v274_v26 = vpop.f32.mrb[1].mxu1 }
 0x1d3   :  { %v233_v27 = vadd.f32 %v232_v23, %v231_v25 }
 0x1d5   :  { %v234_v29 = vadd.f32 %v233_v27, %v230_v28 }
 0x1d7   :  { %235 = vst.msk [vmem:[#allocation7] sm:$0xf] %vm58_vm3, %v234_v29 }
 0x1d8   :  { %323 = shalt.err (!%p320_p1)
}
 0x1d9   :  { %s324_s30 = scalar_lea.hbm %s420_s4, 64 }
 0x1da   :  { %p325_p2 = scmp.ne.s32.totalorder %s420_s4, %s324_s30  ;;  %p328_p3 = scmp.lt.u32.totalorder %s324_s30, %s420_s4 }
 0x1dc   :  { %p330_p4 = pnand %p328_p3, %p325_p2 }
 0x1de   :  { %333 = shalt.err (!%p330_p4)
}
 0x1df   :  { %245 = dma.vmem_to_hbm [thread:$0]  %s243_s26, 64, %s420_s4, [#allocation4]  }
 0x1e0   :  { %338 = dma.done.wait [#allocation4], 64  }
 0x1e1   :  { %339 = vsyncadd [#allocation4], 4294967232 }
 0x1e2   :  { %249 = vsyncpa [#allocation3], 1 }
 0x1e3   :  { %250 = vsyncpa [#allocation4], 1 }
 0x1e4   :  { %251 = vsyncpa [#allocation5], 1 }

</bundles_post_ra>
